<compile_context>
chip_gen: v7x
topology: tpu7x:2x2x1
jax: 0.10.0
libtpu: 0.0.40
codegen_flags: <defaults>
</compile_context>

<pallas_src>
import jax
import jax.numpy as jnp
from jax.experimental import pallas as pl
from jax.experimental.pallas import tpu as pltpu


def _round_up(x: int, m: int) -> int:
    return (x + m - 1) // m * m


def _extract_kernel(y_ref, sel_ref, out_ref):
    """y_ref:   (TILE_R, C)  rows of flattened YOLO output (rows=sublanes, C=lanes)
       sel_ref: (C, 2)       one-hot selector: col 0 -> objectness (ch 4),
                             col 1 -> attacked class (ch 5 + cls_id)
       out_ref: (2, TILE_R)  fused lane-dense output slab
    """
    picked = jnp.dot(
        y_ref[...], sel_ref[...],
        preferred_element_type=jnp.float32,
        precision=jax.lax.Precision.HIGHEST,   # exact one-hot pick for f32 inputs
    )                                          # (TILE_R, 2)
    # Small transpose of the (TILE_R, 2) result only (XLU work, hidden under the
    # input DMA) so the output block is lane-dense and its writeback contiguous.
    out_ref[...] = picked.T.astype(out_ref.dtype)


def _pick_tile_rows(n_rows: int, max_tile_rows: int) -> int:
    """Row-tile: multiple of 128 (lane-dense output), large (few grid steps),
    but at least 2 grid steps when possible so v7x's two TensorCores split the work."""
    if n_rows <= 128:
        return 128
    tile = _round_up(pl.cdiv(n_rows, 2), 128)       # >= 2 steps
    return min(tile, _round_up(max_tile_rows, 128))  # cap per-step VMEM


def max_prob_extract(yolo_output: jax.Array, cls_id, *, max_tile_rows: int = 8192):
    """Functional forward: yolo_output [B, N, C] (C >= 5 + num_cls), cls_id int
    (python int or traced int32 scalar). Returns (objectness[B,N], class_prob[B,N])."""
    B, N, C = yolo_output.shape
    R = B * N
    dt = yolo_output.dtype

    # Native layout; contiguous dim-merge is free (no data movement).
    y2d = yolo_output.reshape(R, C)

    # Channel selection as data -> one compiled kernel serves every cls_id.
    obj_col = jax.nn.one_hot(4, C, dtype=dt)
    cls_col = jax.nn.one_hot(5 + cls_id, C, dtype=dt)
    sel = jnp.stack([obj_col, cls_col], axis=1)      # (C, 2)

    tile = _pick_tile_rows(R, max_tile_rows)

    out = pl.pallas_call(
        _extract_kernel,
        out_shape=jax.ShapeDtypeStruct((2, R), dt),          # exact: no pad, no post-slice
        grid=(pl.cdiv(R, tile),),
        in_specs=[
            pl.BlockSpec((tile, C), lambda r: (r, 0)),        # read tensor once, full sublanes
            pl.BlockSpec((C, 2), lambda r: (0, 0)),           # tiny selector, resident
        ],
        out_specs=pl.BlockSpec((2, tile), lambda r: (0, r)),  # fused lane-dense slab
        compiler_params=pltpu.CompilerParams(
            dimension_semantics=("parallel",)),
    )(y2d, sel)

    return out[0].reshape(B, N), out[1].reshape(B, N)


class MaxProbExtractor:
    """Drop-in equivalent of the PyTorch module (forward + set_cls_id_attacked)."""

    def __init__(self, cls_id: int = 0, num_cls: int = 80):
        self.cls_id = cls_id
        self.num_cls = num_cls
        # cls_id is passed as data, so switching the attacked class never recompiles.
        self._fn = jax.jit(max_prob_extract)

    def set_cls_id_attacked(self, cls_id: int):
        self.cls_id = cls_id

    def __call__(self, yolo_output: jax.Array):
        assert yolo_output.shape[-1] >= 5 + self.num_cls
        return self._fn(yolo_output, jnp.int32(self.cls_id))

    forward = __call__


if __name__ == "__main__":
    num_cls = 80
    B, N, C = 2, 512, 5 + num_cls                     # small [batch, n_preds, 85]

    key = jax.random.PRNGKey(0)
    yolo_output = jax.random.uniform(key, (B, N, C), dtype=jnp.float32)

    extractor = MaxProbExtractor(cls_id=0, num_cls=num_cls)
    for cls_id in (0, 7):                             # same compiled kernel for both
        extractor.set_cls_id_attacked(cls_id)
        objectness, class_prob = jax.block_until_ready(extractor(yolo_output))

        # Reference: plain slicing, same semantics as the PyTorch module.
        ref_obj = yolo_output[:, :, 4]
        ref_cls = yolo_output[:, :, 5:5 + num_cls][:, :, cls_id]
        assert objectness.shape == (B, N) and class_prob.shape == (B, N)
        assert jnp.allclose(objectness, ref_obj, rtol=1e-6, atol=1e-6)
        assert jnp.allclose(class_prob, ref_cls, rtol=1e-6, atol=1e-6)

    print("KERNEL_OK")
</pallas_src>

<mosaic_0001>
module attributes {stable_mosaic.version = 11 : i64} {
  func.func @_extract_kernel(%arg0: i32, %arg1: memref<512x85xf32, #tpu.memory_space<vmem>>, %arg2: memref<85x2xf32, #tpu.memory_space<vmem>>, %arg3: memref<2x512xf32, #tpu.memory_space<vmem>>) attributes {dimension_semantics = [#tpu.dimension_semantics<parallel>], iteration_bounds = array<i64: 2>, scalar_prefetch = 0 : i64, scratch_operands = 0 : i64, tpu.core_type = #tpu.core_type<tc>, window_params = [{transform_indices = @transform_0, window_bounds = array<i64: 512, 85>}, {pipeline_mode = #tpu.pipeline_mode<synchronous>, transform_indices = @transform_1, window_bounds = array<i64: 85, 2>}, {transform_indices = @transform_2, window_bounds = array<i64: 2, 512>}]} {
    %c0 = arith.constant 0 : index
    %c0_0 = arith.constant 0 : index
    %0 = vector.load %arg1[%c0, %c0_0] : memref<512x85xf32, #tpu.memory_space<vmem>>, vector<512x85xf32>
    %c0_1 = arith.constant 0 : index
    %c0_2 = arith.constant 0 : index
    %1 = vector.load %arg2[%c0_1, %c0_2] : memref<85x2xf32, #tpu.memory_space<vmem>>, vector<85x2xf32>
    %cst = arith.constant dense<0.000000e+00> : vector<512x2xf32>
    %2 = tpu.matmul %0, %1, %cst {dimension_numbers = #tpu.dot_dimension_numbers<[1], [0], [0], [1], [0, 0, 1, 1], [], []>, precision = #tpu.contract_precision<fp32>} : vector<512x85xf32>, vector<85x2xf32>, vector<512x2xf32> -> vector<512x2xf32>
    %3 = tpu.transpose %2, [1, 0] : vector<512x2xf32> -> vector<2x512xf32>
    %c0_3 = arith.constant 0 : index
    %c0_4 = arith.constant 0 : index
    %4 = vector.load %arg3[%c0_3, %c0_4] : memref<2x512xf32, #tpu.memory_space<vmem>>, vector<2x512xf32>
    tpu.vector_store %arg3[%c0_3, %c0_4], %3 {strides = array<i32>} : memref<2x512xf32, #tpu.memory_space<vmem>>, vector<2x512xf32>,
    return
  }
  func.func @transform_0(%arg0: i32) -> (i32, i32) {
    %c0_i32 = arith.constant 0 : i32
    %c0_i32_0 = arith.constant 0 : i32
    return %arg0, %c0_i32 : i32, i32
  }
  func.func @transform_1(%arg0: i32) -> (i32, i32) {
    %c0_i32 = arith.constant 0 : i32
    %c0_i32_0 = arith.constant 0 : i32
    %c0_i32_1 = arith.constant 0 : i32
    return %c0_i32, %c0_i32_0 : i32, i32
  }
  func.func @transform_2(%arg0: i32) -> (i32, i32) {
    %c0_i32 = arith.constant 0 : i32
    %c0_i32_0 = arith.constant 0 : i32
    return %c0_i32, %arg0 : i32, i32
  }
}

</mosaic_0001>

<bundles_post_ra>
// kernel: squeeze.3
= control target key start
LH: loop header
LB: loop body
LE: loop exit
PB: predicated region body
PF: predicated region fallthrough
CT: control target
= control target key end

     0   :  { %2 = vsyncpa [#allocation1], 0  ;;  %s93_s0 = inlined_call_operand.vmem [shape: f32[1024], index: 0, kind: input, shape index: {}]   ;;  %s94_s1 = inlined_call_operand.hbm [shape: f32[2,512], index: 1, kind: output, shape index: {}]  }
   0x1   :  { %v3_v0 = vld [vmem:[%s93_s0] sm:$0xff]   ;;  %s67_s0 = smov [#allocation0]  }
   0x2   :  { %4 = vst [vmem:[#allocation2] ss:$8 sm:$0xf] %v3_v0   ;;  %6 = vst [vmem:[#allocation2 - $0x1f] ss:$8 sm:$0xf0] %v3_v0  }
   0x3   :  { %s34_s8 = sshll.u32 %s67_s0, 4  ;;  %s35_s8 = int_to_ptr.vmem [resolvable:$true] %s34_s8 }
   0x4   :  { %s43_s9 = scalar_lea.vmem %s35_s8, 128  ;;  %p48_p1 = scmp.lt.s32.totalorder %s35_s8, %s35_s8 }
   0x5   :  { %p44_p0 = scmp.ne.s32.totalorder %s35_s8, %s43_s9  ;;  %p49_p2 = scmp.lt.s32.totalorder %s43_s9, %s43_s9 }
   0x7   :  { %p50_p3 = por %p49_p2, %p48_p1 }
   0x9   :  { %v10_v1 = vld [vmem:[#allocation2] sm:$0x3]  ;;  %v14_v2 = vld [vmem:[#allocation2 + $0x8] sm:$0x3]  ;;  %v19_v3 = vld [vmem:[#allocation2 + $0x10] sm:$0x3]  ;;  %p51_p4 = pnand %p50_p3, %p44_p0 }
   0xa   :  { %12 = vst [vmem:[#allocation0] sm:$0x3] %v10_v1  ;;  %17 = vst [vmem:[#allocation0 + $0x2] sm:$0x3] %v14_v2  ;;  %v25_v4 = vld [vmem:[#allocation2 + $0x18] sm:$0x3] }
   0xb   :  { %23 = vst [vmem:[#allocation0 + $0x4] sm:$0x3] %v19_v3  ;;  %29 = vst [vmem:[#allocation0 + $0x6] sm:$0x3] %v25_v4 }
   0xc   :  { %54 = shalt.err (!%p51_p4)
}
   0xd   :  { %s55_s12 = scalar_lea.hbm %s94_s1, 128 }
   0xe   :  { %p56_p5 = scmp.ne.s32.totalorder %s94_s1, %s55_s12  ;;  %p59_p6 = scmp.lt.u32.totalorder %s55_s12, %s94_s1 }
  0x10   :  { %p61_p7 = pnand %p59_p6, %p56_p5 }
  0x12   :  { %64 = shalt.err (!%p61_p7)
}
  0x13   :  { %37 = dma.vmem_to_hbm [thread:$0]  %s35_s8, 128, %s94_s1, [#allocation1]  }
  0x14   :  { %65 = dma.done.wait [#allocation1], 128  }
  0x15   :  { %66 = vsyncadd [#allocation1], 4294967168 }
  0x16   :  { %39 = vsyncpa [#allocation1], 1 }

</bundles_post_ra>
